<compile_context>
chip_gen: v6e
topology: v6e:2x2x1
jax: 0.10.0
libtpu: 0.0.40
codegen_flags: <defaults>
</compile_context>

<pallas_src>
import numpy as np
import jax
import jax.numpy as jnp
from jax.experimental import pallas as pl
from jax.experimental.pallas import tpu as pltpu

BN_EPS = 1e-5
LEAKY_SLOPE = 0.1


# ------------------------------ Pallas kernel ------------------------------ #
def _conv_set_kernel(x_ref, r_ref,
                     k1_ref, b1_ref, k2_ref, b2_ref, k3_ref, b3_ref,
                     k4_ref, b4_ref, k5_ref, b5_ref, o_ref):
    """Fused conv(1x1)/conv(3x3)/conv(1x1)/conv(3x3)/conv(1x1) + BN + LeakyReLU
    for one image.

    x_ref : (1, H, W*Cin)   bf16  lane-dense activation slab
    r_ref : (3, H, H)       bf16  row-shift matrices (kh = 0, 1, 2)
    kX_ref: banded / block-diag folded weights, bf16
    bX_ref: (1, W*CoutX)    f32   folded BN bias, tiled over W
    o_ref : (1, H, W*Cout)  f32
    """

    def leaky(y):
        # epilogue stays in f32 (v5e has no bf16 VPU); cast only on store.
        return jnp.where(y >= 0.0, y, LEAKY_SLOPE * y)

    def conv1x1(a_bf, k_ref, b_ref):
        y = jnp.dot(a_bf, k_ref[...], preferred_element_type=jnp.float32)
        return leaky(y + b_ref[...])

    def conv3x3(a_bf, k_ref, b_ref):
        acc = None
        for kh in range(3):
            if kh == 1:                                   # identity row shift
                shifted = a_bf
            else:                                         # +/-1 row, zero pad
                shifted = jnp.dot(
                    r_ref[kh], a_bf,
                    preferred_element_type=jnp.float32).astype(jnp.bfloat16)
            part = jnp.dot(shifted, k_ref[kh],
                           preferred_element_type=jnp.float32)
            acc = part if acc is None else acc + part
        return leaky(acc + b_ref[...])

    a = conv1x1(x_ref[0], k1_ref, b1_ref)                 # (H, W*C1)
    a = conv3x3(a.astype(jnp.bfloat16), k2_ref, b2_ref)   # (H, W*C2)
    a = conv1x1(a.astype(jnp.bfloat16), k3_ref, b3_ref)   # (H, W*C1)
    a = conv3x3(a.astype(jnp.bfloat16), k4_ref, b4_ref)   # (H, W*C2)
    a = conv1x1(a.astype(jnp.bfloat16), k5_ref, b5_ref)   # (H, W*C1)
    o_ref[0] = a.astype(o_ref.dtype)


def _full_spec(arr):
    zeros = (0,) * arr.ndim
    return pl.BlockSpec(arr.shape, lambda n, _z=zeros: _z)


def _conv_set_pallas(x_slab, rshift, layer_ops):
    N, H, WCin = x_slab.shape
    WCout = layer_ops[-1][0].shape[-1]

    operands = [x_slab, rshift]
    in_specs = [pl.BlockSpec((1, H, WCin), lambda n: (n, 0, 0)),
                _full_spec(rshift)]
    for kmat, bias in layer_ops:
        operands += [kmat, bias]
        in_specs += [_full_spec(kmat), _full_spec(bias)]

    return pl.pallas_call(
        _conv_set_kernel,
        out_shape=jax.ShapeDtypeStruct((N, H, WCout), jnp.float32),
        grid_spec=pltpu.PrefetchScalarGridSpec(
            num_scalar_prefetch=0,
            grid=(N,),
            in_specs=in_specs,
            out_specs=pl.BlockSpec((1, H, WCout), lambda n: (n, 0, 0)),
        ),
        compiler_params=pltpu.CompilerParams(
            dimension_semantics=("parallel",)),
    )(*operands)


@jax.jit
def convolution_set_forward(x_nhwc, rshift, layer_ops):
    N, H, W, Cin = x_nhwc.shape
    # free reshape (channels innermost) to the lane-dense (H, W*C) slab; bf16
    # halves the HBM read of the input.
    x_slab = x_nhwc.reshape(N, H, W * Cin).astype(jnp.bfloat16)
    out = _conv_set_pallas(x_slab, rshift, layer_ops)
    cout = out.shape[-1] // W
    return out.reshape(N, H, W, cout)


# ----------------------- parameter init / preparation ---------------------- #
def init_params(key, in_channels, out_channels):
    """Parameters matching the PyTorch __init__ (conv std=0.01, default BN)."""
    cfg = [
        (in_channels, out_channels, 1),
        (out_channels, out_channels * 2, 3),
        (out_channels * 2, out_channels, 1),
        (out_channels, out_channels * 2, 3),
        (out_channels * 2, out_channels, 1),
    ]
    params = []
    for cin, cout, k in cfg:
        key, sub = jax.random.split(key)
        params.append(dict(
            w=0.01 * jax.random.normal(sub, (cout, cin, k, k), jnp.float32),
            gamma=jnp.ones((cout,), jnp.float32),
            beta=jnp.zeros((cout,), jnp.float32),
            mean=jnp.zeros((cout,), jnp.float32),
            var=jnp.ones((cout,), jnp.float32),
            k=k,
        ))
    return params


def build_row_shift(H):
    """(3, H, H) 0/1 matrices: (R_kh @ a)[h] = a[h + kh - 1], zero outside."""
    r = np.zeros((3, H, H), np.float32)
    for kh in range(3):
        dh = kh - 1
        for h in range(H):
            if 0 <= h + dh < H:
                r[kh, h, h + dh] = 1.0
    return jnp.asarray(r, jnp.bfloat16)


def build_layer_ops(params, W):
    """Fold eval-mode BN into the conv weights and re-encode every layer as a
    lane-dense (W*Cin, W*Cout) matmul (block-diag for 1x1, banded per-kh for
    3x3).  Weights -> bf16, biases stay f32."""
    ops = []
    for p in params:
        w = np.asarray(p["w"], np.float32)               # (Cout, Cin, k, k)
        gamma = np.asarray(p["gamma"], np.float32)
        beta = np.asarray(p["beta"], np.float32)
        mean = np.asarray(p["mean"], np.float32)
        var = np.asarray(p["var"], np.float32)
        scale = gamma / np.sqrt(var + BN_EPS)
        bias = beta - mean * scale
        wf = w * scale[:, None, None, None]              # fold BN scale
        cout, cin, k, _ = wf.shape
        if k == 1:
            wt = wf[:, :, 0, 0].T                        # (Cin, Cout)
            kmat = np.zeros((W * cin, W * cout), np.float32)
            for col in range(W):
                kmat[col * cin:(col + 1) * cin,
                     col * cout:(col + 1) * cout] = wt
        else:
            w4 = np.transpose(wf, (2, 3, 1, 0))          # (kh, kw, Cin, Cout)
            kmat = np.zeros((3, W * cin, W * cout), np.float32)
            for kh in range(3):
                for kw in range(3):
                    for col in range(W):
                        src = col + kw - 1
                        if 0 <= src < W:
                            kmat[kh,
                                 src * cin:(src + 1) * cin,
                                 col * cout:(col + 1) * cout] = w4[kh, kw]
        bwide = np.tile(bias, W)[None, :]                # (1, W*Cout)
        ops.append((jnp.asarray(kmat, jnp.bfloat16),
                    jnp.asarray(bwide, jnp.float32)))
    return tuple(ops)


# --------------------------- plain-JAX reference ---------------------------- #
def reference_forward(x_nhwc, params):
    y = x_nhwc
    for p in params:
        k = p["k"]
        pad = (k - 1) // 2
        conv = jax.lax.conv_general_dilated(
            y, p["w"], window_strides=(1, 1),
            padding=((pad, pad), (pad, pad)),
            dimension_numbers=("NHWC", "OIHW", "NHWC"))
        scale = p["gamma"] / jnp.sqrt(p["var"] + BN_EPS)
        bias = p["beta"] - p["mean"] * scale
        conv = conv * scale.reshape(1, 1, 1, -1) + bias.reshape(1, 1, 1, -1)
        y = jnp.where(conv >= 0, conv, LEAKY_SLOPE * conv)
    return y


if __name__ == "__main__":
    batch, in_channels, out_channels, spatial = 2, 4, 8, 16
    key = jax.random.PRNGKey(0)
    key, xkey = jax.random.split(key)
    # PyTorch input would be NCHW (2, 4, 16, 16); NHWC is used internally.
    x_nchw = jax.random.normal(
        xkey, (batch, in_channels, spatial, spatial), dtype=jnp.float32)
    x_nhwc = jnp.transpose(x_nchw, (0, 2, 3, 1))

    params = init_params(key, in_channels, out_channels)
    layer_ops = build_layer_ops(params, spatial)
    rshift = build_row_shift(spatial)

    out = convolution_set_forward(x_nhwc, rshift, layer_ops)
    out = jax.block_until_ready(out)

    ref = reference_forward(x_nhwc, params)

    assert out.shape == (batch, spatial, spatial, out_channels), out.shape
    err = float(jnp.max(jnp.abs(out - ref)))
    ref_scale = float(jnp.max(jnp.abs(ref)))
    # bf16 matmul operands (f32 accumulation) vs. the all-f32 reference.
    assert err <= 5e-2 * ref_scale + 1e-8, (err, ref_scale)

    print("KERNEL_OK")
</pallas_src>

<mosaic_0001>
module attributes {stable_mosaic.version = 11 : i64} {
  func.func @_conv_set_kernel(%arg0: i32, %arg1: memref<1x16x64xbf16, #tpu.memory_space<vmem>>, %arg2: memref<3x16x16xbf16, #tpu.memory_space<vmem>>, %arg3: memref<64x128xbf16, #tpu.memory_space<vmem>>, %arg4: memref<1x128xf32, #tpu.memory_space<vmem>>, %arg5: memref<3x128x256xbf16, #tpu.memory_space<vmem>>, %arg6: memref<1x256xf32, #tpu.memory_space<vmem>>, %arg7: memref<256x128xbf16, #tpu.memory_space<vmem>>, %arg8: memref<1x128xf32, #tpu.memory_space<vmem>>, %arg9: memref<3x128x256xbf16, #tpu.memory_space<vmem>>, %arg10: memref<1x256xf32, #tpu.memory_space<vmem>>, %arg11: memref<256x128xbf16, #tpu.memory_space<vmem>>, %arg12: memref<1x128xf32, #tpu.memory_space<vmem>>, %arg13: memref<1x16x128xf32, #tpu.memory_space<vmem>>) attributes {dimension_semantics = [#tpu.dimension_semantics<parallel>], iteration_bounds = array<i64: 2>, scalar_prefetch = 0 : i64, scratch_operands = 0 : i64, tpu.core_type = #tpu.core_type<tc>, window_params = [{transform_indices = @transform_0, window_bounds = array<i64: 1, 16, 64>}, {pipeline_mode = #tpu.pipeline_mode<synchronous>, transform_indices = @transform_1, window_bounds = array<i64: 3, 16, 16>}, {pipeline_mode = #tpu.pipeline_mode<synchronous>, transform_indices = @transform_2, window_bounds = array<i64: 64, 128>}, {pipeline_mode = #tpu.pipeline_mode<synchronous>, transform_indices = @transform_3, window_bounds = array<i64: 1, 128>}, {pipeline_mode = #tpu.pipeline_mode<synchronous>, transform_indices = @transform_4, window_bounds = array<i64: 3, 128, 256>}, {pipeline_mode = #tpu.pipeline_mode<synchronous>, transform_indices = @transform_5, window_bounds = array<i64: 1, 256>}, {pipeline_mode = #tpu.pipeline_mode<synchronous>, transform_indices = @transform_6, window_bounds = array<i64: 256, 128>}, {pipeline_mode = #tpu.pipeline_mode<synchronous>, transform_indices = @transform_7, window_bounds = array<i64: 1, 128>}, {pipeline_mode = #tpu.pipeline_mode<synchronous>, transform_indices = @transform_8, window_bounds = array<i64: 3, 128, 256>}, {pipeline_mode = #tpu.pipeline_mode<synchronous>, transform_indices = @transform_9, window_bounds = array<i64: 1, 256>}, {pipeline_mode = #tpu.pipeline_mode<synchronous>, transform_indices = @transform_10, window_bounds = array<i64: 256, 128>}, {pipeline_mode = #tpu.pipeline_mode<synchronous>, transform_indices = @transform_11, window_bounds = array<i64: 1, 128>}, {transform_indices = @transform_12, window_bounds = array<i64: 1, 16, 128>}]} {
    %c0 = arith.constant 0 : index
    %c0_0 = arith.constant 0 : index
    %c0_1 = arith.constant 0 : index
    %0 = vector.load %arg1[%c0, %c0_0, %c0_1] : memref<1x16x64xbf16, #tpu.memory_space<vmem>>, vector<1x16x64xbf16>
    %1 = vector.shape_cast %0 : vector<1x16x64xbf16> to vector<16x64xbf16>
    %c0_2 = arith.constant 0 : index
    %c0_3 = arith.constant 0 : index
    %2 = vector.load %arg3[%c0_2, %c0_3] : memref<64x128xbf16, #tpu.memory_space<vmem>>, vector<64x128xbf16>
    %cst = arith.constant dense<0.000000e+00> : vector<16x128xf32>
    %3 = tpu.matmul %1, %2, %cst {dimension_numbers = #tpu.dot_dimension_numbers<[1], [0], [0], [1], [0, 0, 1, 1], [], []>} : vector<16x64xbf16>, vector<64x128xbf16>, vector<16x128xf32> -> vector<16x128xf32>
    %c0_4 = arith.constant 0 : index
    %c0_5 = arith.constant 0 : index
    %4 = vector.load %arg4[%c0_4, %c0_5] : memref<1x128xf32, #tpu.memory_space<vmem>>, vector<1x128xf32>
    %5 = vector.broadcast %4 : vector<1x128xf32> to vector<16x128xf32>
    %6 = arith.addf %3, %5 : vector<16x128xf32>
    %cst_6 = arith.constant 0.000000e+00 : f32
    %7 = vector.broadcast %cst_6 : f32 to vector<16x128xf32>
    %8 = arith.cmpf oge, %6, %7 : vector<16x128xf32>
    %cst_7 = arith.constant 1.000000e-01 : f32
    %9 = vector.broadcast %cst_7 : f32 to vector<16x128xf32>
    %10 = arith.mulf %9, %6 : vector<16x128xf32>
    %11 = arith.select %8, %6, %10 : vector<16x128xi1>, vector<16x128xf32>
    %12 = arith.truncf %11 : vector<16x128xf32> to vector<16x128xbf16>
    %c0_8 = arith.constant 0 : index
    %c0_9 = arith.constant 0 : index
    %c0_10 = arith.constant 0 : index
    %13 = vector.load %arg2[%c0_8, %c0_9, %c0_10] : memref<3x16x16xbf16, #tpu.memory_space<vmem>>, vector<1x16x16xbf16>
    %14 = vector.shape_cast %13 : vector<1x16x16xbf16> to vector<16x16xbf16>
    %cst_11 = arith.constant dense<0.000000e+00> : vector<16x128xf32>
    %15 = tpu.matmul %14, %12, %cst_11 {dimension_numbers = #tpu.dot_dimension_numbers<[1], [0], [0], [1], [0, 0, 1, 1], [], []>} : vector<16x16xbf16>, vector<16x128xbf16>, vector<16x128xf32> -> vector<16x128xf32>
    %16 = arith.truncf %15 : vector<16x128xf32> to vector<16x128xbf16>
    %c0_12 = arith.constant 0 : index
    %c0_13 = arith.constant 0 : index
    %c0_14 = arith.constant 0 : index
    %17 = vector.load %arg5[%c0_12, %c0_13, %c0_14] : memref<3x128x256xbf16, #tpu.memory_space<vmem>>, vector<1x128x256xbf16>
    %18 = vector.shape_cast %17 : vector<1x128x256xbf16> to vector<128x256xbf16>
    %cst_15 = arith.constant dense<0.000000e+00> : vector<16x256xf32>
    %19 = tpu.matmul %16, %18, %cst_15 {dimension_numbers = #tpu.dot_dimension_numbers<[1], [0], [0], [1], [0, 0, 1, 1], [], []>} : vector<16x128xbf16>, vector<128x256xbf16>, vector<16x256xf32> -> vector<16x256xf32>
    %c1 = arith.constant 1 : index
    %c0_16 = arith.constant 0 : index
    %c0_17 = arith.constant 0 : index
    %20 = vector.load %arg5[%c1, %c0_16, %c0_17] : memref<3x128x256xbf16, #tpu.memory_space<vmem>>, vector<1x128x256xbf16>
    %21 = vector.shape_cast %20 : vector<1x128x256xbf16> to vector<128x256xbf16>
    %cst_18 = arith.constant dense<0.000000e+00> : vector<16x256xf32>
    %22 = tpu.matmul %12, %21, %cst_18 {dimension_numbers = #tpu.dot_dimension_numbers<[1], [0], [0], [1], [0, 0, 1, 1], [], []>} : vector<16x128xbf16>, vector<128x256xbf16>, vector<16x256xf32> -> vector<16x256xf32>
    %23 = arith.addf %19, %22 : vector<16x256xf32>
    %c2 = arith.constant 2 : index
    %c0_19 = arith.constant 0 : index
    %c0_20 = arith.constant 0 : index
    %24 = vector.load %arg2[%c2, %c0_19, %c0_20] : memref<3x16x16xbf16, #tpu.memory_space<vmem>>, vector<1x16x16xbf16>
    %25 = vector.shape_cast %24 : vector<1x16x16xbf16> to vector<16x16xbf16>
    %cst_21 = arith.constant dense<0.000000e+00> : vector<16x128xf32>
    %26 = tpu.matmul %25, %12, %cst_21 {dimension_numbers = #tpu.dot_dimension_numbers<[1], [0], [0], [1], [0, 0, 1, 1], [], []>} : vector<16x16xbf16>, vector<16x128xbf16>, vector<16x128xf32> -> vector<16x128xf32>
    %27 = arith.truncf %26 : vector<16x128xf32> to vector<16x128xbf16>
    %c2_22 = arith.constant 2 : index
    %c0_23 = arith.constant 0 : index
    %c0_24 = arith.constant 0 : index
    %28 = vector.load %arg5[%c2_22, %c0_23, %c0_24] : memref<3x128x256xbf16, #tpu.memory_space<vmem>>, vector<1x128x256xbf16>
    %29 = vector.shape_cast %28 : vector<1x128x256xbf16> to vector<128x256xbf16>
    %cst_25 = arith.constant dense<0.000000e+00> : vector<16x256xf32>
    %30 = tpu.matmul %27, %29, %cst_25 {dimension_numbers = #tpu.dot_dimension_numbers<[1], [0], [0], [1], [0, 0, 1, 1], [], []>} : vector<16x128xbf16>, vector<128x256xbf16>, vector<16x256xf32> -> vector<16x256xf32>
    %31 = arith.addf %23, %30 : vector<16x256xf32>
    %c0_26 = arith.constant 0 : index
    %c0_27 = arith.constant 0 : index
    %32 = vector.load %arg6[%c0_26, %c0_27] : memref<1x256xf32, #tpu.memory_space<vmem>>, vector<1x256xf32>
    %33 = vector.broadcast %32 : vector<1x256xf32> to vector<16x256xf32>
    %34 = arith.addf %31, %33 : vector<16x256xf32>
    %cst_28 = arith.constant 0.000000e+00 : f32
    %35 = vector.broadcast %cst_28 : f32 to vector<16x256xf32>
    %36 = arith.cmpf oge, %34, %35 : vector<16x256xf32>
    %cst_29 = arith.constant 1.000000e-01 : f32
    %37 = vector.broadcast %cst_29 : f32 to vector<16x256xf32>
    %38 = arith.mulf %37, %34 : vector<16x256xf32>
    %39 = arith.select %36, %34, %38 : vector<16x256xi1>, vector<16x256xf32>
    %40 = arith.truncf %39 : vector<16x256xf32> to vector<16x256xbf16>
    %c0_30 = arith.constant 0 : index
    %c0_31 = arith.constant 0 : index
    %41 = vector.load %arg7[%c0_30, %c0_31] : memref<256x128xbf16, #tpu.memory_space<vmem>>, vector<256x128xbf16>
    %cst_32 = arith.constant dense<0.000000e+00> : vector<16x128xf32>
    %42 = tpu.matmul %40, %41, %cst_32 {dimension_numbers = #tpu.dot_dimension_numbers<[1], [0], [0], [1], [0, 0, 1, 1], [], []>} : vector<16x256xbf16>, vector<256x128xbf16>, vector<16x128xf32> -> vector<16x128xf32>
    %c0_33 = arith.constant 0 : index
    %c0_34 = arith.constant 0 : index
    %43 = vector.load %arg8[%c0_33, %c0_34] : memref<1x128xf32, #tpu.memory_space<vmem>>, vector<1x128xf32>
    %44 = vector.broadcast %43 : vector<1x128xf32> to vector<16x128xf32>
    %45 = arith.addf %42, %44 : vector<16x128xf32>
    %cst_35 = arith.constant 0.000000e+00 : f32
    %46 = vector.broadcast %cst_35 : f32 to vector<16x128xf32>
    %47 = arith.cmpf oge, %45, %46 : vector<16x128xf32>
    %cst_36 = arith.constant 1.000000e-01 : f32
    %48 = vector.broadcast %cst_36 : f32 to vector<16x128xf32>
    %49 = arith.mulf %48, %45 : vector<16x128xf32>
    %50 = arith.select %47, %45, %49 : vector<16x128xi1>, vector<16x128xf32>
    %51 = arith.truncf %50 : vector<16x128xf32> to vector<16x128xbf16>
    %c0_37 = arith.constant 0 : index
    %c0_38 = arith.constant 0 : index
    %c0_39 = arith.constant 0 : index
    %52 = vector.load %arg2[%c0_37, %c0_38, %c0_39] : memref<3x16x16xbf16, #tpu.memory_space<vmem>>, vector<1x16x16xbf16>
    %53 = vector.shape_cast %52 : vector<1x16x16xbf16> to vector<16x16xbf16>
    %cst_40 = arith.constant dense<0.000000e+00> : vector<16x128xf32>
    %54 = tpu.matmul %53, %51, %cst_40 {dimension_numbers = #tpu.dot_dimension_numbers<[1], [0], [0], [1], [0, 0, 1, 1], [], []>} : vector<16x16xbf16>, vector<16x128xbf16>, vector<16x128xf32> -> vector<16x128xf32>
    %55 = arith.truncf %54 : vector<16x128xf32> to vector<16x128xbf16>
    %c0_41 = arith.constant 0 : index
    %c0_42 = arith.constant 0 : index
    %c0_43 = arith.constant 0 : index
    %56 = vector.load %arg9[%c0_41, %c0_42, %c0_43] : memref<3x128x256xbf16, #tpu.memory_space<vmem>>, vector<1x128x256xbf16>
    %57 = vector.shape_cast %56 : vector<1x128x256xbf16> to vector<128x256xbf16>
    %cst_44 = arith.constant dense<0.000000e+00> : vector<16x256xf32>
    %58 = tpu.matmul %55, %57, %cst_44 {dimension_numbers = #tpu.dot_dimension_numbers<[1], [0], [0], [1], [0, 0, 1, 1], [], []>} : vector<16x128xbf16>, vector<128x256xbf16>, vector<16x256xf32> -> vector<16x256xf32>
    %c1_45 = arith.constant 1 : index
    %c0_46 = arith.constant 0 : index
    %c0_47 = arith.constant 0 : index
    %59 = vector.load %arg9[%c1_45, %c0_46, %c0_47] : memref<3x128x256xbf16, #tpu.memory_space<vmem>>, vector<1x128x256xbf16>
    %60 = vector.shape_cast %59 : vector<1x128x256xbf16> to vector<128x256xbf16>
    %cst_48 = arith.constant dense<0.000000e+00> : vector<16x256xf32>
    %61 = tpu.matmul %51, %60, %cst_48 {dimension_numbers = #tpu.dot_dimension_numbers<[1], [0], [0], [1], [0, 0, 1, 1], [], []>} : vector<16x128xbf16>, vector<128x256xbf16>, vector<16x256xf32> -> vector<16x256xf32>
    %62 = arith.addf %58, %61 : vector<16x256xf32>
    %c2_49 = arith.constant 2 : index
    %c0_50 = arith.constant 0 : index
    %c0_51 = arith.constant 0 : index
    %63 = vector.load %arg2[%c2_49, %c0_50, %c0_51] : memref<3x16x16xbf16, #tpu.memory_space<vmem>>, vector<1x16x16xbf16>
    %64 = vector.shape_cast %63 : vector<1x16x16xbf16> to vector<16x16xbf16>
    %cst_52 = arith.constant dense<0.000000e+00> : vector<16x128xf32>
    %65 = tpu.matmul %64, %51, %cst_52 {dimension_numbers = #tpu.dot_dimension_numbers<[1], [0], [0], [1], [0, 0, 1, 1], [], []>} : vector<16x16xbf16>, vector<16x128xbf16>, vector<16x128xf32> -> vector<16x128xf32>
    %66 = arith.truncf %65 : vector<16x128xf32> to vector<16x128xbf16>
    %c2_53 = arith.constant 2 : index
    %c0_54 = arith.constant 0 : index
    %c0_55 = arith.constant 0 : index
    %67 = vector.load %arg9[%c2_53, %c0_54, %c0_55] : memref<3x128x256xbf16, #tpu.memory_space<vmem>>, vector<1x128x256xbf16>
    %68 = vector.shape_cast %67 : vector<1x128x256xbf16> to vector<128x256xbf16>
    %cst_56 = arith.constant dense<0.000000e+00> : vector<16x256xf32>
    %69 = tpu.matmul %66, %68, %cst_56 {dimension_numbers = #tpu.dot_dimension_numbers<[1], [0], [0], [1], [0, 0, 1, 1], [], []>} : vector<16x128xbf16>, vector<128x256xbf16>, vector<16x256xf32> -> vector<16x256xf32>
    %70 = arith.addf %62, %69 : vector<16x256xf32>
    %c0_57 = arith.constant 0 : index
    %c0_58 = arith.constant 0 : index
    %71 = vector.load %arg10[%c0_57, %c0_58] : memref<1x256xf32, #tpu.memory_space<vmem>>, vector<1x256xf32>
    %72 = vector.broadcast %71 : vector<1x256xf32> to vector<16x256xf32>
    %73 = arith.addf %70, %72 : vector<16x256xf32>
    %cst_59 = arith.constant 0.000000e+00 : f32
    %74 = vector.broadcast %cst_59 : f32 to vector<16x256xf32>
    %75 = arith.cmpf oge, %73, %74 : vector<16x256xf32>
    %cst_60 = arith.constant 1.000000e-01 : f32
    %76 = vector.broadcast %cst_60 : f32 to vector<16x256xf32>
    %77 = arith.mulf %76, %73 : vector<16x256xf32>
    %78 = arith.select %75, %73, %77 : vector<16x256xi1>, vector<16x256xf32>
    %79 = arith.truncf %78 : vector<16x256xf32> to vector<16x256xbf16>
    %c0_61 = arith.constant 0 : index
    %c0_62 = arith.constant 0 : index
    %80 = vector.load %arg11[%c0_61, %c0_62] : memref<256x128xbf16, #tpu.memory_space<vmem>>, vector<256x128xbf16>
    %cst_63 = arith.constant dense<0.000000e+00> : vector<16x128xf32>
    %81 = tpu.matmul %79, %80, %cst_63 {dimension_numbers = #tpu.dot_dimension_numbers<[1], [0], [0], [1], [0, 0, 1, 1], [], []>} : vector<16x256xbf16>, vector<256x128xbf16>, vector<16x128xf32> -> vector<16x128xf32>
    %c0_64 = arith.constant 0 : index
    %c0_65 = arith.constant 0 : index
    %82 = vector.load %arg12[%c0_64, %c0_65] : memref<1x128xf32, #tpu.memory_space<vmem>>, vector<1x128xf32>
    %83 = vector.broadcast %82 : vector<1x128xf32> to vector<16x128xf32>
    %84 = arith.addf %81, %83 : vector<16x128xf32>
    %cst_66 = arith.constant 0.000000e+00 : f32
    %85 = vector.broadcast %cst_66 : f32 to vector<16x128xf32>
    %86 = arith.cmpf oge, %84, %85 : vector<16x128xf32>
    %cst_67 = arith.constant 1.000000e-01 : f32
    %87 = vector.broadcast %cst_67 : f32 to vector<16x128xf32>
    %88 = arith.mulf %87, %84 : vector<16x128xf32>
    %89 = arith.select %86, %84, %88 : vector<16x128xi1>, vector<16x128xf32>
    %c0_68 = arith.constant 0 : index
    %c0_69 = arith.constant 0 : index
    %c0_70 = arith.constant 0 : index
    %90 = vector.load %arg13[%c0_68, %c0_69, %c0_70] : memref<1x16x128xf32, #tpu.memory_space<vmem>>, vector<1x16x128xf32>
    %91 = vector.shape_cast %90 : vector<1x16x128xf32> to vector<16x128xf32>
    %92 = vector.shape_cast %89 : vector<16x128xf32> to vector<1x16x128xf32>
    tpu.vector_store %arg13[%c0_68, %c0_69, %c0_70], %92 {strides = array<i32>} : memref<1x16x128xf32, #tpu.memory_space<vmem>>, vector<1x16x128xf32>,
    return
  }
  func.func @transform_0(%arg0: i32) -> (i32, i32, i32) {
    %c0_i32 = arith.constant 0 : i32
    %c0_i32_0 = arith.constant 0 : i32
    %c0_i32_1 = arith.constant 0 : i32
    return %arg0, %c0_i32, %c0_i32_0 : i32, i32, i32
  }
  func.func @transform_1(%arg0: i32) -> (i32, i32, i32) {
    %c0_i32 = arith.constant 0 : i32
    %c0_i32_0 = arith.constant 0 : i32
    %c0_i32_1 = arith.constant 0 : i32
    %c0_i32_2 = arith.constant 0 : i32
    return %c0_i32, %c0_i32_0, %c0_i32_1 : i32, i32, i32
  }
  func.func @transform_2(%arg0: i32) -> (i32, i32) {
    %c0_i32 = arith.constant 0 : i32
    %c0_i32_0 = arith.constant 0 : i32
    %c0_i32_1 = arith.constant 0 : i32
    return %c0_i32, %c0_i32_0 : i32, i32
  }
  func.func @transform_3(%arg0: i32) -> (i32, i32) {
    %c0_i32 = arith.constant 0 : i32
    %c0_i32_0 = arith.constant 0 : i32
    %c0_i32_1 = arith.constant 0 : i32
    return %c0_i32, %c0_i32_0 : i32, i32
  }
  func.func @transform_4(%arg0: i32) -> (i32, i32, i32) {
    %c0_i32 = arith.constant 0 : i32
    %c0_i32_0 = arith.constant 0 : i32
    %c0_i32_1 = arith.constant 0 : i32
    %c0_i32_2 = arith.constant 0 : i32
    return %c0_i32, %c0_i32_0, %c0_i32_1 : i32, i32, i32
  }
  func.func @transform_5(%arg0: i32) -> (i32, i32) {
    %c0_i32 = arith.constant 0 : i32
    %c0_i32_0 = arith.constant 0 : i32
    %c0_i32_1 = arith.constant 0 : i32
    return %c0_i32, %c0_i32_0 : i32, i32
  }
  func.func @transform_6(%arg0: i32) -> (i32, i32) {
    %c0_i32 = arith.constant 0 : i32
    %c0_i32_0 = arith.constant 0 : i32
    %c0_i32_1 = arith.constant 0 : i32
    return %c0_i32, %c0_i32_0 : i32, i32
  }
  func.func @transform_7(%arg0: i32) -> (i32, i32) {
    %c0_i32 = arith.constant 0 : i32
    %c0_i32_0 = arith.constant 0 : i32
    %c0_i32_1 = arith.constant 0 : i32
    return %c0_i32, %c0_i32_0 : i32, i32
  }
  func.func @transform_8(%arg0: i32) -> (i32, i32, i32) {
    %c0_i32 = arith.constant 0 : i32
    %c0_i32_0 = arith.constant 0 : i32
    %c0_i32_1 = arith.constant 0 : i32
    %c0_i32_2 = arith.constant 0 : i32
    return %c0_i32, %c0_i32_0, %c0_i32_1 : i32, i32, i32
  }
  func.func @transform_9(%arg0: i32) -> (i32, i32) {
    %c0_i32 = arith.constant 0 : i32
    %c0_i32_0 = arith.constant 0 : i32
    %c0_i32_1 = arith.constant 0 : i32
    return %c0_i32, %c0_i32_0 : i32, i32
  }
  func.func @transform_10(%arg0: i32) -> (i32, i32) {
    %c0_i32 = arith.constant 0 : i32
    %c0_i32_0 = arith.constant 0 : i32
    %c0_i32_1 = arith.constant 0 : i32
    return %c0_i32, %c0_i32_0 : i32, i32
  }
  func.func @transform_11(%arg0: i32) -> (i32, i32) {
    %c0_i32 = arith.constant 0 : i32
    %c0_i32_0 = arith.constant 0 : i32
    %c0_i32_1 = arith.constant 0 : i32
    return %c0_i32, %c0_i32_0 : i32, i32
  }
  func.func @transform_12(%arg0: i32) -> (i32, i32, i32) {
    %c0_i32 = arith.constant 0 : i32
    %c0_i32_0 = arith.constant 0 : i32
    %c0_i32_1 = arith.constant 0 : i32
    return %arg0, %c0_i32, %c0_i32_0 : i32, i32, i32
  }
}

</mosaic_0001>

<bundles_post_ra>
// kernel: convolution_set_forward.1
= control target key start
LH: loop header
LB: loop body
LE: loop exit
PB: predicated region body
PF: predicated region fallthrough
CT: control target
= control target key end

     0   :  { %17 = vsyncpa [#allocation3], 0  ;;  %s3259_s0 = inlined_call_operand.vmem [shape: bf16[2,16,64], index: 0, kind: input, shape index: {}]   ;;  %s3260_s1 = inlined_call_operand.vmem [shape: bf16[3,16,16], index: 1, kind: input, shape index: {}]   ;;  %s3261_s2 = inlined_call_operand.hbm [shape: bf16[64,128], index: 2, kind: input, shape index: {}]   ;;  %s3262_s3 = inlined_call_operand.vmem [shape: f32[1,128], index: 3, kind: input, shape index: {}]   ;;  %s3263_s4 = inlined_call_operand.vmem [shape: bf16[3,128,256], index: 4, kind: input, shape index: {}]   ;;  %s3264_s5 = inlined_call_operand.hbm [shape: f32[1,256], index: 5, kind: input, shape index: {}]   ;;  %s3265_s6 = inlined_call_operand.hbm [shape: bf16[256,128], index: 6, kind: input, shape index: {}]   ;;  %s3266_s7 = inlined_call_operand.vmem [shape: f32[1,128], index: 7, kind: input, shape index: {}]   ;;  %s3267_s8 = inlined_call_operand.hbm [shape: bf16[3,128,256], index: 8, kind: input, shape index: {}]   ;;  %s3268_s9 = inlined_call_operand.vmem [shape: f32[1,256], index: 9, kind: input, shape index: {}]   ;;  %s3269_s10 = inlined_call_operand.hbm [shape: bf16[256,128], index: 10, kind: input, shape index: {}]   ;;  %s3270_s11 = inlined_call_operand.vmem [shape: f32[1,128], index: 11, kind: input, shape index: {}]   ;;  %s3271_s12 = inlined_call_operand.vmem [shape: f32[2,16,128], index: 12, kind: output, shape index: {}]  }
   0x1   :  { %18 = vsyncpa [#allocation5], 0 }
   0x2   :  { %19 = vsyncpa [#allocation8], 0  ;;  %s2921_s21 = smov 0  }
   0x3 LB: > { %s2844_s22 = smov [#allocation4]   ;;  %s2927_s24 = sadd.s32 4294967295, %s2842_s21   ;;  %s2842_s21 = sphi %s2921_s21, %s25_s21  }
   0x4   : > { %s348_s23 = sshll.u32 %s2844_s22, 4  ;;  %p2154_p0 = scmp.ge.s32.totalorder %s2842_s21, 1  ;;  %s349_s23 = int_to_ptr.vmem [resolvable:$true] %s348_s23 }
   0x5   : > { %p313_p1 = scmp.lt.s32.totalorder %s2842_s21, 3  ;;  %p2481_p2 = scmp.eq.s32.totalorder %s2927_s24, 0 }
   0x6   : > { %s2845_s26 = smov [#allocation7]   ;;  %s2846_s29 = smov [#allocation2]  }
   0x7   : > { %p2932_p3 = pnand %p2154_p0, %p313_p1  ;;  %s374_s27 = sshll.u32 %s2845_s26, 4  ;;  %s2938_s27 = int_to_ptr.vmem [resolvable:$true] %s374_s27 }
   0x8   : > { %s328_s30 = sshll.u32 %s2846_s29, 4  ;;  %s2705_s14 = scalar_lea.vmem %s349_s23, 32  ;;  %s2946_s30 = int_to_ptr.vmem [resolvable:$true] %s328_s30 }
   0x9   : > { %p2465_p4 = pneg %p2932_p3  ;;  %p2706_p7 = scmp.ne.s32.totalorder %s349_s23, %s2705_s14 }
   0xa   : > { %p2713_p10 = scmp.lt.s32.totalorder %s349_s23, %s349_s23  ;;  %p2714_p11 = scmp.lt.s32.totalorder %s2705_s14, %s2705_s14 }
   0xb   : > { %p2942_p5 = pnand %p2481_p2, %p2465_p4 }
   0xc   : > { %p2715_p12 = por %p2714_p11, %p2713_p10 }
   0xd   : > { %p2950_p6 = pneg %p2942_p5 }
   0xf   : > { %p2708_p8 = pnand %p2706_p7, %p2950_p6 }
  0x11   : > { %p2709_p9 = pneg %p2708_p8 }
  0x13   : > { %p2716_p13 = pnand %p2715_p12, %p2709_p9 }
  0x15   : > { %2719 = shalt.err (!%p2716_p13)
}
  0x16   : > { %2471 = dma.hbm_to_vmem [thread:$0]  (!%p2942_p5), %s3264_s5, 32, %s349_s23, [#allocation5]  }
  0x17   : > { %s2731_s17 = scalar_lea.vmem %s2938_s27, 6144  ;;  %p2739_p7 = scmp.lt.s32.totalorder %s2938_s27, %s2938_s27 }
  0x18   : > { %p2732_p0 = scmp.ne.s32.totalorder %s2938_s27, %s2731_s17  ;;  %p2740_p8 = scmp.lt.s32.totalorder %s2731_s17, %s2731_s17 }
  0x1a   : > { %p2734_p1 = pnand %p2732_p0, %p2950_p6  ;;  %p2741_p9 = por %p2740_p8, %p2739_p7 }
  0x1c   : > { %p2735_p4 = pneg %p2734_p1 }
  0x1e   : > { %p2742_p10 = pnand %p2741_p9, %p2735_p4 }
  0x20   : > { %2745 = shalt.err (!%p2742_p10)
}
  0x21   : > { %s2847_s18 = smov 128   ;;  %s2848_s19 = smov 8  }
  0x22   : > { %2477 = dma.hbm_to_vmem [thread:$0]  (!%p2942_p5), %s3267_s8, 6144, %s2938_s27, [#allocation8], %s2847_s18, %s2847_s18, %s2848_s19  }
  0x23   : > { %s2757_s23 = scalar_lea.vmem %s2946_s30, 512  ;;  %p2765_p0 = scmp.lt.s32.totalorder %s2946_s30, %s2946_s30 }
  0x24   : > { %p2758_p11 = scmp.ne.s32.totalorder %s2946_s30, %s2757_s23  ;;  %p2766_p1 = scmp.lt.s32.totalorder %s2757_s23, %s2757_s23 }
  0x26   : > { %p2760_p12 = pnand %p2758_p11, %p2950_p6  ;;  %p2767_p4 = por %p2766_p1, %p2765_p0 }
  0x28   : > { %p2761_p13 = pneg %p2760_p12 }
  0x2a   : > { %p2768_p7 = pnand %p2767_p4, %p2761_p13 }
  0x2c   : > { %2771 = shalt.err (!%p2768_p7)
}
  0x2d   : > { %s2849_s26 = smov 64   ;;  %s2850_s29 = smov 4  }
  0x2e   : > { %2468 = dma.hbm_to_vmem [thread:$0]  (!%p2942_p5), %s3261_s2, 512, %s2946_s30, [#allocation3], %s2849_s26, %s2849_s26, %s2850_s29  }
  0x2f   : > { %s2851_s15 = smov [#allocation6]   ;;  %s2852_s17 = smov [#allocation9]  }
  0x30   : > { %s358_s16 = sshll.u32 %s2851_s15, 4  ;;  %s390_s18 = sshll.u32 %s2852_s17, 4  ;;  %s359_s16 = int_to_ptr.vmem [resolvable:$true] %s358_s16  ;;  %s391_s18 = int_to_ptr.vmem [resolvable:$true] %s390_s18 }
  0x31   : > { %s2783_s19 = scalar_lea.vmem %s359_s16, 2048  ;;  %p2791_p11 = scmp.lt.s32.totalorder %s359_s16, %s359_s16 }
  0x32   : > { %p2784_p8 = scmp.ne.s32.totalorder %s359_s16, %s2783_s19  ;;  %p2792_p12 = scmp.lt.s32.totalorder %s2783_s19, %s2783_s19 }
  0x34   : > { %p2786_p9 = pnand %p2784_p8, %p2950_p6  ;;  %p2793_p13 = por %p2792_p12, %p2791_p11 }
  0x36   : > { %p2787_p10 = pneg %p2786_p9 }
  0x38   : > { %p2794_p0 = pnand %p2793_p13, %p2787_p10 }
  0x3a   : > { %2797 = shalt.err (!%p2794_p0)
}
  0x3b   : > { %2474 = dma.hbm_to_vmem [thread:$0]  (!%p2942_p5), %s3265_s6, 2048, %s359_s16, [#allocation5], %s2849_s26, %s2849_s26, %s2850_s29  }
  0x3c   : > { %s2809_s22 = scalar_lea.vmem %s391_s18, 2048  ;;  %p2817_p8 = scmp.lt.s32.totalorder %s391_s18, %s391_s18 }
  0x3d   : > { %p2810_p1 = scmp.ne.s32.totalorder %s391_s18, %s2809_s22  ;;  %p2818_p9 = scmp.lt.s32.totalorder %s2809_s22, %s2809_s22 }
  0x3f   : > { %p2812_p4 = pnand %p2810_p1, %p2950_p6  ;;  %p2819_p11 = por %p2818_p9, %p2817_p8 }
  0x41   : > { %p2813_p7 = pneg %p2812_p4 }
  0x43   : > { %p2820_p10 = pnand %p2819_p11, %p2813_p7 }
  0x45   : > { %2823 = shalt.err (!%p2820_p10)
}
  0x46   : > { %2480 = dma.hbm_to_vmem [thread:$0]  (!%p2942_p5), %s3269_s10, 2048, %s391_s18, [#allocation8], %s2849_s26, %s2849_s26, %s2850_s29  }
  0x47   : > { %417 = sbr.rel (%p2932_p3) target bundleno = 1612 (0x64c), region = 68 }
  0x4c   : > { %2829 = dma.done.wait (%p2481_p2), [#allocation3], 512  }
  0x4d   : > { %2831 = vsyncadd (%p2481_p2), [#allocation3], 4294966784 }
  0x4e   : > { %2833 = dma.done.wait (%p2481_p2), [#allocation5], 2080  }
  0x4f   : > { %2835 = vsyncadd (%p2481_p2), [#allocation5], 4294965216 }
  0x50   : > { %2837 = dma.done.wait (%p2481_p2), [#allocation8], 8192  }
  0x51   : > { %2839 = vsyncadd (%p2481_p2), [#allocation8], 4294959104  ;;  %p475_p3 = scmp.lt.s32.totalorder %s2927_s24, 1  ;;  %v2853_v0 = vmov 0.0   ;;  %vm2854_vm0 = vmmov 0   ;;  %v2511_v1 = vld [vmem:[#allocation2 + $0x18] sm:$0xff]  }
  0x52   : > { %2409 = vmatprep.subr.bf16.mxu0 %v2853_v0  ;;  %2417 = vmatprep.mubr.msk.bf16.mxu0 %vm2854_vm0, %v2853_v0  ;;  %v2512_v2 = vld [vmem:[#allocation2 + $0x10] sm:$0xff]   ;;  %v2513_v3 = vld [vmem:[#allocation2 + $0x8] sm:$0xff]   ;;  %v2514_v4 = vld [vmem:[#allocation2] sm:$0xff]   ;;  %vm532_vm1 = vcmask 523264   ;;  %v2855_v6 = vmov 0   ;;  %vm591_vm4 = vcmask 130048  }
  0x53   : > { %2421 = vmatprep.subr.bf16.mxu1 %v2853_v0  ;;  %2423 = vmatprep.mubr.msk.bf16.mxu1 %vm2854_vm0, %v2853_v0  ;;  %s3276_s24 = smov (!%p475_p3, %s2927_s24), 1  ;;  %v2542_v7 = vld [vmem:[%s3263_s4 + $0x70] ss:$8 sps:$4 sm:$0xff]   ;;  %v2544_v8 = vld [vmem:[%s3263_s4 + $0x74] ss:$8 sps:$4 sm:$0xff]   ;;  %v3091_v34 = vld [vmem:[%s3260_s1] sm:$0xff]  }
  0x54   : > { %s2350_s25 = sshll.u32 %s3276_s24, 3  ;;  %2410 = vmatpush3.bf16.msra.mxu0 %v2511_v1  ;;  %v2547_v9 = vld [vmem:[%s3263_s4 + $0x64] ss:$8 sps:$4 sm:$0xff]   ;;  %v2545_v10 = vld [vmem:[%s3263_s4 + $0x60] ss:$8 sps:$4 sm:$0xff]   ;;  %v3147_v50 = vld [vmem:[%s3260_s1 + $0x10] sm:$0xff]  }
  0x55   : > { %2411 = vmatprep.subr.bf16.mxu0 %v2853_v0  ;;  %s479_s26 = scalar_lea.vmem %s3259_s0, %s2350_s25  ;;  %v2550_v11 = vld [vmem:[%s3263_s4 + $0x54] ss:$8 sps:$4 sm:$0xff]   ;;  %v2548_v12 = vld [vmem:[%s3263_s4 + $0x50] ss:$8 sps:$4 sm:$0xff]   ;;  %v2553_v13 = vld [vmem:[%s3263_s4 + $0x44] ss:$8 sps:$4 sm:$0xff]  }
  0x56   : > { %v2515_v5 = vld [vmem:[%s479_s26] sm:$0xff]   ;;  %v2556_v15 = vld [vmem:[%s3263_s4 + $0x34] ss:$8 sps:$4 sm:$0xff]   ;;  %v2554_v16 = vld [vmem:[%s3263_s4 + $0x30] ss:$8 sps:$4 sm:$0xff]   ;;  %s2351_s25 = sshll.u32 %s3276_s24, 4 }
  0x57   : > { %v2551_v14 = vld [vmem:[%s3263_s4 + $0x40] ss:$8 sps:$4 sm:$0xff]   ;;  %v2559_v17 = vld [vmem:[%s3263_s4 + $0x24] ss:$8 sps:$4 sm:$0xff]   ;;  %v2562_v19 = vld [vmem:[%s3263_s4 + $0x14] ss:$8 sps:$4 sm:$0xff]   ;;  %s484_s26 = scalar_lea.vmem %s3271_s12, %s2351_s25 }
  0x58   : > { %2412 = vmatpush3.bf16.msra.mxu0 %v2512_v2  ;;  %v2557_v18 = vld [vmem:[%s3263_s4 + $0x20] ss:$8 sps:$4 sm:$0xff]   ;;  %v2560_v20 = vld [vmem:[%s3263_s4 + $0x10] ss:$8 sps:$4 sm:$0xff]   ;;  %v2519_v32 = vld [vmem:[%s3263_s4 + $0xf4] ss:$8 sps:$4 sm:$0xff]  }
  0x59   : > { %2413 = vmatprep.subr.bf16.mxu0 %v2853_v0  ;;  %v2171_v21 = vld [vmem:[%s3262_s3] ss:$0 sm:$0xff]  ;;  %v2517_v35 = vld [vmem:[%s3263_s4 + $0xf0] ss:$8 sps:$4 sm:$0xff]   ;;  %v2522_v36 = vld [vmem:[%s3263_s4 + $0xe4] ss:$8 sps:$4 sm:$0xff]  }
  0x5a   : > { %v2520_v37 = vld [vmem:[%s3263_s4 + $0xe0] ss:$8 sps:$4 sm:$0xff]   ;;  %v2525_v38 = vld [vmem:[%s3263_s4 + $0xd4] ss:$8 sps:$4 sm:$0xff]   ;;  %v2523_v39 = vld [vmem:[%s3263_s4 + $0xd0] ss:$8 sps:$4 sm:$0xff]  }
  0x5b   : > { %v2528_v40 = vld [vmem:[%s3263_s4 + $0xc4] ss:$8 sps:$4 sm:$0xff]   ;;  %v2526_v41 = vld [vmem:[%s3263_s4 + $0xc0] ss:$8 sps:$4 sm:$0xff]   ;;  %v2531_v42 = vld [vmem:[%s3263_s4 + $0xb4] ss:$8 sps:$4 sm:$0xff]  }
  0x5c   : > { %2414 = vmatpush3.bf16.msra.mxu0 %v2513_v3  ;;  %v2529_v43 = vld [vmem:[%s3263_s4 + $0xb0] ss:$8 sps:$4 sm:$0xff]   ;;  %v2534_v44 = vld [vmem:[%s3263_s4 + $0xa4] ss:$8 sps:$4 sm:$0xff]   ;;  %v2532_v45 = vld [vmem:[%s3263_s4 + $0xa0] ss:$8 sps:$4 sm:$0xff]  }
  0x5d   : > { %2415 = vmatprep.subr.bf16.mxu0 %v2853_v0  ;;  %v2537_v46 = vld [vmem:[%s3263_s4 + $0x94] ss:$8 sps:$4 sm:$0xff]   ;;  %v2535_v47 = vld [vmem:[%s3263_s4 + $0x90] ss:$8 sps:$4 sm:$0xff]   ;;  %v2540_v48 = vld [vmem:[%s3263_s4 + $0x84] ss:$8 sps:$4 sm:$0xff]  }
  0x5e   : > { %v2538_v49 = vld [vmem:[%s3263_s4 + $0x80] ss:$8 sps:$4 sm:$0xff]   ;;  %v2565_v51 = vld [vmem:[%s3263_s4 + $0x4] ss:$8 sps:$4 sm:$0xff]   ;;  %v2566_v53 = vld [vmem:[%s3263_s4 + $0x170] ss:$8 sps:$4 sm:$0xff]  }
  0x5f   : > { %v2563_v52 = vld [vmem:[%s3263_s4] ss:$8 sps:$4 sm:$0xff]   ;;  %v2568_v54 = vld [vmem:[%s3263_s4 + $0x174] ss:$8 sps:$4 sm:$0xff]   ;;  %v2571_v55 = vld [vmem:[%s3263_s4 + $0x164] ss:$8 sps:$4 sm:$0xff]  }
  0x60   : > { %2416 = vmatpush3.bf16.msra.mxu0 %v2514_v4  ;;  %v2569_v56 = vld [vmem:[%s3263_s4 + $0x160] ss:$8 sps:$4 sm:$0xff]   ;;  %v2574_v57 = vld [vmem:[%s3263_s4 + $0x154] ss:$8 sps:$4 sm:$0xff]   ;;  %v2572_v58 = vld [vmem:[%s3263_s4 + $0x150] ss:$8 sps:$4 sm:$0xff]  }
  0x61   : > { %873 = vmatprep.subr.bf16.mxu0 %v2544_v8  ;;  %v2577_v59 = vld [vmem:[%s3263_s4 + $0x144] ss:$8 sps:$4 sm:$0xff]   ;;  %v2575_v60 = vld [vmem:[%s3263_s4 + $0x140] ss:$8 sps:$4 sm:$0xff]   ;;  %v2580_v61 = vld [vmem:[%s3263_s4 + $0x134] ss:$8 sps:$4 sm:$0xff]  }
  0x62   : > { %v2578_v62 = vld [vmem:[%s3263_s4 + $0x130] ss:$8 sps:$4 sm:$0xff]   ;;  %v2583_v63 = vld [vmem:[%s3263_s4 + $0x124] ss:$8 sps:$4 sm:$0xff]   ;;  %v2581_v1 = vld [vmem:[%s3263_s4 + $0x120] ss:$8 sps:$4 sm:$0xff]  }
  0x63   : > { %2418 = vmatmul.mubr.msk.bf16.vlgmr.msra.gmra.mxu0 %vm532_vm1, %v2515_v5  ;;  %v2586_v2 = vld [vmem:[%s3263_s4 + $0x114] ss:$8 sps:$4 sm:$0xff]   ;;  %v2584_v3 = vld [vmem:[%s3263_s4 + $0x110] ss:$8 sps:$4 sm:$0xff]   ;;  %v2589_v4 = vld [vmem:[%s3263_s4 + $0x104] ss:$8 sps:$4 sm:$0xff]  }
  0x64   : > { %905 = vmatprep.mubr.bf16.mxu0 %v2855_v6  ;;  %874 = vmatpush1.bf16.msra.mxu0 %v2542_v7  ;;  %v2587_v5 = vld [vmem:[%s3263_s4 + $0x100] ss:$8 sps:$4 sm:$0xff]  }
  0x65   : > { %875 = vmatprep.subr.bf16.mxu0 %v2547_v9 }
  0x68   : > { %876 = vmatpush1.bf16.msra.mxu0 %v2545_v10 }
  0x69   : > { %877 = vmatprep.subr.bf16.mxu0 %v2550_v11 }
  0x6c   : > { %878 = vmatpush1.bf16.msra.mxu0 %v2548_v12 }
  0x6d   : > { %879 = vmatprep.subr.bf16.mxu0 %v2553_v13 }
  0x70   : > { %880 = vmatpush1.bf16.msra.mxu0 %v2551_v14 }
  0x71   : > { %881 = vmatprep.subr.bf16.mxu0 %v2556_v15 }
  0x74   : > { %882 = vmatpush1.bf16.msra.mxu0 %v2554_v16 }
  0x75   : > { %883 = vmatprep.subr.bf16.mxu0 %v2559_v17 }
  0x78   : > { %884 = vmatpush1.bf16.msra.mxu0 %v2557_v18 }
  0x79   : > { %885 = vmatprep.subr.bf16.mxu0 %v2562_v19 }
  0x7c   : > { %886 = vmatpush1.bf16.msra.mxu0 %v2560_v20 }
  0x7d   : > { %887 = vmatprep.subr.bf16.mxu0 %v2565_v51 }
  0x80   : > { %888 = vmatpush1.bf16.msra.mxu0 %v2563_v52 }
 0x123   : > { %v570_v22 = vpop.f32.mrf.mxu0 }
 0x124   : > { %v571_v23 = vadd.f32 %v2171_v21, %v570_v22  ;;  %v2591_v22 = vld [vmem:[#allocation6 + $0x38] sm:$0xff]  }
 0x125   : > { %v2419_v24 = vpop.f32.mrf.mxu0 }
 0x126   : > { %v579_v26 = vmul.f32 0.1, %v571_v23  ;;  %vm577_vm2 = vcmp.ge.f32.partialorder %v571_v23, 0.0  ;;  %v2593_v24 = vld [vmem:[#allocation6 + $0x30] sm:$0xff]  }
 0x127   : > { %v573_v25 = vpop.f32.mrf.mxu0 }
 0x128   : > { %v574_v27 = vadd.f32 %v2171_v21, %v573_v25  ;;  %v581_v30 = vsel %vm577_vm2, %v571_v23, %v579_v26  ;;  %v2590_v21 = vld [vmem:[#allocation6 + $0x78] sm:$0xff]   ;;  %v2592_v23 = vld [vmem:[#allocation6 + $0x70] sm:$0xff]   ;;  %v2594_v25 = vld [vmem:[#allocation6 + $0x68] sm:$0xff]  }
 0x129   : > { %v2420_v28 = vpop.f32.mrf.mxu0  ;;  %2361 = vmatprep.subr.bf16.mxu0 %v2590_v21  ;;  %v2595_v26 = vld [vmem:[#allocation6 + $0x28] sm:$0xff]  }
 0x12a   : > { %vm578_vm3 = vcmp.ge.f32.partialorder %v574_v27, 0.0  ;;  %v580_v29 = vmul.f32 0.1, %v574_v27  ;;  %v2597_v28 = vld [vmem:[#allocation6 + $0x20] sm:$0xff]  }
 0x12b   : > { %v2615_v21 = vld [vmem:[#allocation7 + $0xc0] ss:$8 sps:$4 sm:$0xff]  }
 0x12c   : > { %v582_v31 = vsel %vm578_vm3, %v574_v27, %v580_v29  ;;  %v2596_v27 = vld [vmem:[#allocation6 + $0x60] sm:$0xff]   ;;  %v2598_v29 = vld [vmem:[#allocation6 + $0x58] sm:$0xff]  }
 0x12d   : > { %v583_v33 = vpack.c.bf16 %v582_v31, %v581_v30  ;;  %v2599_v30 = vld [vmem:[#allocation6 + $0x18] sm:$0xff]   ;;  %v2600_v31 = vld [vmem:[#allocation6 + $0x50] sm:$0xff]  }
 0x12f   : > { %2422 = vmatpush3.bf16.msra.mxu1 %v583_v33 }
 0x130   : > { %750 = vmatprep.subr.bf16.mxu1 %v2519_v32  ;;  %v2601_v32 = vld [vmem:[#allocation6 + $0x10] sm:$0xff]  }
 0x132   : > { %2424 = vmatmul.mubr.msk.bf16.vlgmr.msra.gmra.mxu1 %vm591_vm4, %v3091_v34 }
 0x133   : > { %751 = vmatpush1.bf16.msra.mxu1 %v2517_v35  ;;  %782 = vmatprep.mubr.bf16.mxu1 %v2855_v6  ;;  %v2603_v35 = vld [vmem:[#allocation6 + $0x8] sm:$0xff]  }
 0x134   : > { %752 = vmatprep.subr.bf16.mxu1 %v2522_v36  ;;  %v2604_v36 = vld [vmem:[#allocation6 + $0x40] sm:$0xff]  }
 0x137   : > { %753 = vmatpush1.bf16.msra.mxu1 %v2520_v37  ;;  %v2605_v37 = vld [vmem:[#allocation6] sm:$0xff]  }
 0x138   : > { %754 = vmatprep.subr.bf16.mxu1 %v2525_v38  ;;  %v2608_v38 = vld [vmem:[#allocation7 + $0xf4] ss:$8 sps:$4 sm:$0xff]  }
 0x13b   : > { %755 = vmatpush1.bf16.msra.mxu1 %v2523_v39 }
 0x13c   : > { %756 = vmatprep.subr.bf16.mxu1 %v2528_v40  ;;  %v1115_v40 = vlaneseq }
 0x13f   : > { %757 = vmatpush1.bf16.msra.mxu1 %v2526_v41 }
 0x140   : > { %758 = vmatprep.subr.bf16.mxu1 %v2531_v42  ;;  %v3209_v42 = vshrl.u32 %v1115_v40, 7 }
 0x143   : > { %759 = vmatpush1.bf16.msra.mxu1 %v2529_v43  ;;  %v1121_v43 = vsub.s32 1, %v3209_v42 }
 0x144   : > { %760 = vmatprep.subr.bf16.mxu1 %v2534_v44 }
 0x147   : > { %761 = vmatpush1.bf16.msra.mxu1 %v2532_v45  ;;  %v1117_v45 = vsub.s32 0, %v3209_v42 }
 0x148   : > { %762 = vmatprep.subr.bf16.mxu1 %v2537_v46 }
 0x14b   : > { %763 = vmatpush1.bf16.msra.mxu1 %v2535_v47  ;;  %v1113_v47 = vld [vmem:[#allocation4] sm:$0x3] }
 0x14c   : > { %764 = vmatprep.subr.bf16.mxu1 %v2540_v48  ;;  %v1122_v52 = vrot.slane %v1113_v47, %v1121_v43 }
 0x14f   : > { %765 = vmatpush1.bf16.msra.mxu1 %v2538_v49 }
 0x150   : > { %2427 = vmatprep.subr.bf16.mxu1 %v2853_v0 }
 0x152   : > { %783 = vmatmul.mubr.bf16.vlgmr.msra.gmra.mxu1 %v583_v33 }
 0x153   : > { %2428 = vmatpush3.bf16.msra.mxu1 %v583_v33  ;;  %2429 = vmatprep.mubr.msk.bf16.mxu1 %vm2854_vm0, %v2853_v0  ;;  %v2602_v33 = vld [vmem:[#allocation6 + $0x48] sm:$0xff]  }
 0x154   : > { %1066 = vmatprep.subr.bf16.mxu1 %v2568_v54 }
 0x15a   : > { %2430 = vmatmul.mubr.msk.bf16.vlgmr.msra.gmra.mxu1 %vm591_vm4, %v3147_v50 }
 0x15b   : > { %1098 = vmatprep.mubr.bf16.mxu1 %v2855_v6  ;;  %1067 = vmatpush1.bf16.msra.mxu1 %v2566_v53 }
 0x15c   : > { %1068 = vmatprep.subr.bf16.mxu1 %v2571_v55 }
 0x15f   : > { %1069 = vmatpush1.bf16.msra.mxu1 %v2569_v56  ;;  %v1118_v56 = vrot.slane %v1113_v47, %v1117_v45 }
 0x160   : > { %1070 = vmatprep.subr.bf16.mxu1 %v2574_v57 }
 0x163   : > { %1071 = vmatpush1.bf16.msra.mxu1 %v2572_v58 }
 0x164   : > { %1072 = vmatprep.subr.bf16.mxu1 %v2577_v59 }
 0x167   : > { %1073 = vmatpush1.bf16.msra.mxu1 %v2575_v60 }
 0x168   : > { %1074 = vmatprep.subr.bf16.mxu1 %v2580_v61 }
 0x16b   : > { %1075 = vmatpush1.bf16.msra.mxu1 %v2578_v62 }
 0x16c   : > { %1076 = vmatprep.subr.bf16.mxu1 %v2583_v63 }
 0x16f   : > { %1077 = vmatpush1.bf16.msra.mxu1 %v2581_v1 }
 0x170   : > { %1078 = vmatprep.subr.bf16.mxu1 %v2586_v2 }
 0x173   : > { %1079 = vmatpush1.bf16.msra.mxu1 %v2584_v3 }
 0x174   : > { %1080 = vmatprep.subr.bf16.mxu1 %v2589_v4 }
 0x177   : > { %1081 = vmatpush1.bf16.msra.mxu1 %v2587_v5 }
 0x178   : > { %2433 = vmatprep.subr.bf16.mxu1 %v2853_v0 }
 0x1f2   : > { %v629_v7 = vpop.f32.mrf.mxu1 }
 0x1f4   : > { %v2425_v8 = vpop.f32.mrf.mxu1 }
 0x1f6   : > { %v632_v9 = vpop.f32.mrf.mxu1 }
 0x1f7   : > { %v636_v10 = vpack.c.bf16 %v632_v9, %v629_v7 }
 0x1f8   : > { %v2426_v11 = vpop.f32.mrf.mxu1 }
 0x1f9   : > { %906 = vmatmul.mubr.bf16.vlgmr.msra.gmra.mxu0 %v636_v10 }
 0x1fa   : > { %2362 = vmatpush3.bf16.msra.mxu0 %v2591_v22  ;;  %v2620_v22 = vld [vmem:[#allocation7 + $0xb4] ss:$8 sps:$4 sm:$0xff]  }
 0x1fb   : > { %2363 = vmatprep.subr.bf16.mxu0 %v2592_v23  ;;  %v2618_v23 = vld [vmem:[#allocation7 + $0xb0] ss:$8 sps:$4 sm:$0xff]  }
 0x1fe   : > { %2364 = vmatpush3.bf16.msra.mxu0 %v2593_v24  ;;  %v2623_v24 = vld [vmem:[#allocation7 + $0xa4] ss:$8 sps:$4 sm:$0xff]  }
 0x1ff   : > { %2365 = vmatprep.subr.bf16.mxu0 %v2594_v25  ;;  %v2621_v25 = vld [vmem:[#allocation7 + $0xa0] ss:$8 sps:$4 sm:$0xff]  }
 0x202   : > { %2366 = vmatpush3.bf16.msra.mxu0 %v2595_v26  ;;  %v2626_v26 = vld [vmem:[#allocation7 + $0x94] ss:$8 sps:$4 sm:$0xff]  }
 0x203   : > { %2367 = vmatprep.subr.bf16.mxu0 %v2596_v27  ;;  %v2624_v27 = vld [vmem:[#allocation7 + $0x90] ss:$8 sps:$4 sm:$0xff]  }
 0x206   : > { %2368 = vmatpush3.bf16.msra.mxu0 %v2597_v28  ;;  %v2629_v28 = vld [vmem:[#allocation7 + $0x84] ss:$8 sps:$4 sm:$0xff]  }
 0x207   : > { %2369 = vmatprep.subr.bf16.mxu0 %v2598_v29  ;;  %v2627_v29 = vld [vmem:[#allocation7 + $0x80] ss:$8 sps:$4 sm:$0xff]  }
 0x20a   : > { %2370 = vmatpush3.bf16.msra.mxu0 %v2599_v30 }
 0x20b   : > { %2371 = vmatprep.subr.bf16.mxu0 %v2600_v31  ;;  %v2264_v31 = vld [vmem:[%s3266_s7] ss:$0 sm:$0xff] }
 0x20e   : > { %2372 = vmatpush3.bf16.msra.mxu0 %v2601_v32 }
 0x20f   : > { %2373 = vmatprep.subr.bf16.mxu0 %v2602_v33 }
 0x212   : > { %v784_v12 = vpop.f32.mrf.mxu1  ;;  %2374 = vmatpush3.bf16.msra.mxu0 %v2603_v35 }
 0x213   : > { %2375 = vmatprep.subr.bf16.mxu0 %v2604_v36 }
 0x214   : > { %v786_v13 = vpop.f32.mrf.mxu1 }
 0x216   : > { %v788_v14 = vpop.f32.mrf.mxu1  ;;  %2376 = vmatpush3.bf16.msra.mxu0 %v2605_v37 }
 0x217   : > { %1481 = vmatprep.subr.bf16.mxu0 %v2608_v38 }
 0x218   : > { %v790_v15 = vpop.f32.mrf.mxu1 }
 0x21a   : > { %v961_v16 = vpop.f32.mrf.mxu1 }
 0x21c   : > { %v2431_v17 = vpop.f32.mrf.mxu1 }
 0x21d   : > { %v2609_v17 = vld [vmem:[#allocation7 + $0xe0] ss:$8 sps:$4 sm:$0xff]  }
 0x21e   : > { %v964_v18 = vpop.f32.mrf.mxu1 }
 0x21f   : > { %v968_v19 = vpack.c.bf16 %v964_v18, %v961_v16  ;;  %v2611_v16 = vld [vmem:[#allocation7 + $0xe4] ss:$8 sps:$4 sm:$0xff]   ;;  %v2614_v18 = vld [vmem:[#allocation7 + $0xd4] ss:$8 sps:$4 sm:$0xff]  }
 0x220   : > { %v2432_v20 = vpop.f32.mrf.mxu1 }
 0x221   : > { %1099 = vmatmul.mubr.bf16.vlgmr.msra.gmra.mxu1 %v968_v19  ;;  %v2612_v19 = vld [vmem:[#allocation7 + $0xd0] ss:$8 sps:$4 sm:$0xff]   ;;  %v2617_v20 = vld [vmem:[#allocation7 + $0xc4] ss:$8 sps:$4 sm:$0xff]  }
 0x222   : > { %2435 = vmatprep.mubr.msk.bf16.mxu1 %vm2854_vm0, %v2853_v0 }
 0x2b9   : > { %v907_v39 = vpop.f32.mrf.mxu0 }
 0x2ba   : > { %v908_v48 = vadd.f32 %v907_v39, %v784_v12 }
 0x2bb   : > { %v909_v41 = vpop.f32.mrf.mxu0 }
 0x2bc   : > { %v910_v49 = vadd.f32 %v909_v41, %v786_v13 }
 0x2bd   : > { %v911_v44 = vpop.f32.mrf.mxu0 }
 0x2be   : > { %v912_v53 = vadd.f32 %v911_v44, %v788_v14  ;;  %v2606_v14 = vld [vmem:[#allocation7 + $0xf0] ss:$8 sps:$4 sm:$0xff]  }
 0x2bf   : > { %v913_v54 = vpop.f32.mrf.mxu0 }
 0x2c0   : > { %v914_v60 = vadd.f32 %v913_v54, %v790_v15  ;;  %v2636_v54 = vld [vmem:[#allocation7 + $0x50] ss:$8 sps:$4 sm:$0xff]  }
 0x2e1   : > { %v1100_v46 = vpop.f32.mrf.mxu1 }
 0x2e2   : > { %v1109_v55 = vadd.f32 %v1100_v46, %v908_v48  ;;  %v2632_v48 = vld [vmem:[#allocation7 + $0x74] ss:$8 sps:$4 sm:$0xff]  }
 0x2e3   : > { %v1102_v51 = vpop.f32.mrf.mxu1 }
 0x2e4   : > { %v1110_v57 = vadd.f32 %v1102_v51, %v910_v49  ;;  %v1125_v63 = vadd.f32 %v1118_v56, %v1109_v55  ;;  %v2630_v49 = vld [vmem:[#allocation7 + $0x70] ss:$8 sps:$4 sm:$0xff]   ;;  %v2635_v51 = vld [vmem:[#allocation7 + $0x64] ss:$8 sps:$4 sm:$0xff]  }
 0x2e5   : > { %v1104_v58 = vpop.f32.mrf.mxu1  ;;  %v2641_v55 = vld [vmem:[#allocation7 + $0x44] ss:$8 sps:$4 sm:$0xff]  }
 0x2e6   : > { %v1111_v59 = vadd.f32 %v1104_v58, %v912_v53  ;;  %v1126_v61 = vadd.f32 %v1122_v52, %v1110_v57  ;;  %v1133_v7 = vmul.f32 0.1, %v1125_v63  ;;  %vm1129_vm7 = vcmp.ge.f32.partialorder %v1125_v63, 0.0  ;;  %v2638_v53 = vld [vmem:[#allocation7 + $0x54] ss:$8 sps:$4 sm:$0xff]  }
 0x2e7   : > { %v1106_v62 = vpop.f32.mrf.mxu1  ;;  %v2642_v57 = vld [vmem:[#allocation7 + $0x30] ss:$8 sps:$4 sm:$0xff]   ;;  %v2645_v58 = vld [vmem:[#allocation7 + $0x20] ss:$8 sps:$4 sm:$0xff]  }
 0x2e8   : > { %v1127_v1 = vadd.f32 %v1118_v56, %v1111_v59  ;;  %v1112_v2 = vadd.f32 %v1106_v62, %v914_v60  ;;  %v1134_v4 = vmul.f32 0.1, %v1126_v61  ;;  %vm1130_vm6 = vcmp.ge.f32.partialorder %v1126_v61, 0.0  ;;  %v2644_v56 = vld [vmem:[#allocation7 + $0x34] ss:$8 sps:$4 sm:$0xff]  }
 0x2e9   : > { %v1137_v12 = vsel %vm1129_vm7, %v1125_v63, %v1133_v7  ;;  %v2648_v59 = vld [vmem:[#allocation7 + $0x10] ss:$8 sps:$4 sm:$0xff]   ;;  %v2650_v60 = vld [vmem:[#allocation7 + $0x14] ss:$8 sps:$4 sm:$0xff]  }
 0x2ea   : > { %v1135_v3 = vmul.f32 0.1, %v1127_v1  ;;  %vm1131_vm5 = vcmp.ge.f32.partialorder %v1127_v1, 0.0  ;;  %v1128_v5 = vadd.f32 %v1122_v52, %v1112_v2  ;;  %v1138_v10 = vsel %vm1130_vm6, %v1126_v61, %v1134_v4  ;;  %v2633_v52 = vld [vmem:[#allocation7 + $0x60] ss:$8 sps:$4 sm:$0xff]  }
 0x2eb   : > { %v2651_v61 = vld [vmem:[#allocation7] ss:$8 sps:$4 sm:$0xff]   ;;  %v2656_v62 = vld [vmem:[#allocation7 + $0x174] ss:$8 sps:$4 sm:$0xff]  }
 0x2ec   : > { %vm1132_vm8 = vcmp.ge.f32.partialorder %v1128_v5, 0.0  ;;  %v1136_v8 = vmul.f32 0.1, %v1128_v5  ;;  %v1139_v9 = vsel %vm1131_vm5, %v1127_v1, %v1135_v3 }
 0x2ed   : > { %v1141_v15 = vpack.c.bf16 %v1139_v9, %v1137_v12 }
 0x2ee   : > { %v1140_v11 = vsel %vm1132_vm8, %v1128_v5, %v1136_v8  ;;  %v2654_v8 = vld [vmem:[#allocation7 + $0x170] ss:$8 sps:$4 sm:$0xff]  }
 0x2ef   : > { %v1142_v13 = vpack.c.bf16 %v1140_v11, %v1138_v10  ;;  %v2659_v10 = vld [vmem:[#allocation7 + $0x164] ss:$8 sps:$4 sm:$0xff]  }
 0x2f1   : > { %1310 = vmatprep.mubr.bf16.mxu0 %v1142_v13 }
 0x2f2   : > { %1311 = vmatmul.mubr.bf16.vlgmr.msra.gmra.mxu0 %v1141_v15  ;;  %v2662_v15 = vld [vmem:[#allocation7 + $0x154] ss:$8 sps:$4 sm:$0xff]  }
 0x2f3   : > { %1482 = vmatpush1.bf16.msra.mxu0 %v2606_v14  ;;  %1513 = vmatprep.mubr.bf16.mxu0 %v2855_v6  ;;  %v2657_v14 = vld [vmem:[#allocation7 + $0x160] ss:$8 sps:$4 sm:$0xff]  }
 0x2f4   : > { %1483 = vmatprep.subr.bf16.mxu0 %v2611_v16 }
 0x2f7   : > { %1484 = vmatpush1.bf16.msra.mxu0 %v2609_v17 }
 0x2f8   : > { %1485 = vmatprep.subr.bf16.mxu0 %v2614_v18  ;;  %v2660_v18 = vld [vmem:[#allocation7 + $0x150] ss:$8 sps:$4 sm:$0xff]  }
 0x2fb   : > { %1486 = vmatpush1.bf16.msra.mxu0 %v2612_v19  ;;  %v2665_v19 = vld [vmem:[#allocation7 + $0x144] ss:$8 sps:$4 sm:$0xff]  }
 0x2fc   : > { %1487 = vmatprep.subr.bf16.mxu0 %v2617_v20  ;;  %v2663_v20 = vld [vmem:[#allocation7 + $0x140] ss:$8 sps:$4 sm:$0xff]  }
 0x2ff   : > { %1488 = vmatpush1.bf16.msra.mxu0 %v2615_v21  ;;  %v2668_v21 = vld [vmem:[#allocation7 + $0x134] ss:$8 sps:$4 sm:$0xff]  }
 0x300   : > { %1489 = vmatprep.subr.bf16.mxu0 %v2620_v22  ;;  %v2666_v22 = vld [vmem:[#allocation7 + $0x130] ss:$8 sps:$4 sm:$0xff]  }
 0x303   : > { %1490 = vmatpush1.bf16.msra.mxu0 %v2618_v23  ;;  %v2671_v23 = vld [vmem:[#allocation7 + $0x124] ss:$8 sps:$4 sm:$0xff]  }
 0x304   : > { %1491 = vmatprep.subr.bf16.mxu0 %v2623_v24  ;;  %v2669_v24 = vld [vmem:[#allocation7 + $0x120] ss:$8 sps:$4 sm:$0xff]  }
 0x307   : > { %1492 = vmatpush1.bf16.msra.mxu0 %v2621_v25  ;;  %v2672_v25 = vld [vmem:[#allocation7 + $0x110] ss:$8 sps:$4 sm:$0xff]  }
 0x308   : > { %1493 = vmatprep.subr.bf16.mxu0 %v2626_v26  ;;  %v2677_v26 = vld [vmem:[#allocation7 + $0x104] ss:$8 sps:$4 sm:$0xff]  }
 0x30b   : > { %1494 = vmatpush1.bf16.msra.mxu0 %v2624_v27  ;;  %v2675_v27 = vld [vmem:[#allocation7 + $0x100] ss:$8 sps:$4 sm:$0xff]  }
 0x30c   : > { %1495 = vmatprep.subr.bf16.mxu0 %v2629_v28 }
 0x30f   : > { %1496 = vmatpush1.bf16.msra.mxu0 %v2627_v29  ;;  %v2678_v29 = vld [vmem:[#allocation9 + $0x78] sm:$0xff]  }
 0x310   : > { %2439 = vmatprep.subr.bf16.mxu0 %v2853_v0 }
 0x3b2   : > { %v2377_v30 = vpop.f32.mrf.mxu0 }
 0x3b4   : > { %v2378_v32 = vpop.f32.mrf.mxu0 }
 0x3b5   : > { %v2379_v33 = vadd.f32 %v2378_v32, %v2377_v30  ;;  %v2679_v30 = vld [vmem:[#allocation9 + $0x38] sm:$0xff]   ;;  %v2681_v32 = vld [vmem:[#allocation9 + $0x30] sm:$0xff]  }
 0x3b6   : > { %v2380_v35 = vpop.f32.mrf.mxu0 }
 0x3b7   : > { %v1313_v36 = vadd.f32 %v2379_v33, %v2264_v31  ;;  %v2682_v33 = vld [vmem:[#allocation9 + $0x68] sm:$0xff]  }
 0x3b8   : > { %v2381_v37 = vpop.f32.mrf.mxu0 }
 0x3b9   : > { %v2382_v38 = vadd.f32 %v2381_v37, %v2380_v35  ;;  %v1321_v39 = vmul.f32 0.1, %v1313_v36  ;;  %vm1319_vm9 = vcmp.ge.f32.partialorder %v1313_v36, 0.0  ;;  %v2683_v35 = vld [vmem:[#allocation9 + $0x28] sm:$0xff]   ;;  %v2685_v37 = vld [vmem:[#allocation9 + $0x20] sm:$0xff]  }
 0x3bb   : > { %v1316_v40 = vadd.f32 %v2382_v38, %v2264_v31  ;;  %v1323_v44 = vsel %vm1319_vm9, %v1313_v36, %v1321_v39  ;;  %v2680_v31 = vld [vmem:[#allocation9 + $0x70] sm:$0xff]   ;;  %v2684_v36 = vld [vmem:[#allocation9 + $0x60] sm:$0xff]   ;;  %v2686_v38 = vld [vmem:[#allocation9 + $0x58] sm:$0xff]  }
 0x3bc   : > { %v2687_v39 = vld [vmem:[#allocation9 + $0x18] sm:$0xff]  }
 0x3bd   : > { %vm1320_vm10 = vcmp.ge.f32.partialorder %v1316_v40, 0.0  ;;  %v1322_v41 = vmul.f32 0.1, %v1316_v40 }
 0x3bf   : > { %v1324_v46 = vsel %vm1320_vm10, %v1316_v40, %v1322_v41  ;;  %v2688_v40 = vld [vmem:[#allocation9 + $0x50] sm:$0xff]  }
 0x3c0   : > { %v1325_v47 = vpack.c.bf16 %v1324_v46, %v1323_v44  ;;  %v2689_v41 = vld [vmem:[#allocation9 + $0x10] sm:$0xff]   ;;  %v2690_v44 = vld [vmem:[#allocation9 + $0x48] sm:$0xff]  }
 0x3c1   : > { %v2691_v46 = vld [vmem:[#allocation9 + $0x8] sm:$0xff]  }
 0x3c2   : > { %2434 = vmatpush3.bf16.msra.mxu1 %v1325_v47  ;;  %1514 = vmatmul.mubr.bf16.vlgmr.msra.gmra.mxu0 %v1325_v47 }
 0x3c3   : > { %2440 = vmatpush3.bf16.msra.mxu0 %v1325_v47  ;;  %2441 = vmatprep.mubr.msk.bf16.mxu0 %vm2854_vm0, %v2853_v0  ;;  %v2639_v0 = vld [vmem:[#allocation7 + $0x40] ss:$8 sps:$4 sm:$0xff]  }
 0x3c4   : > { %1604 = vmatprep.subr.bf16.mxu1 %v2632_v48  ;;  %2387 = vmatprep.subr.bf16.mxu0 %v2678_v29  ;;  %v2692_v47 = vld [vmem:[#allocation9 + $0x40] sm:$0xff]  }
 0x3c5   : > { %2436 = vmatmul.mubr.msk.bf16.vlgmr.msra.gmra.mxu1 %vm591_vm4, %v3091_v34  ;;  %v2647_v34 = vld [vmem:[#allocation7 + $0x24] ss:$8 sps:$4 sm:$0xff]  }
 0x3c6   : > { %1605 = vmatpush1.bf16.msra.mxu1 %v2630_v49  ;;  %1636 = vmatprep.mubr.bf16.mxu1 %v2855_v6  ;;  %v2693_v48 = vld [vmem:[#allocation9] sm:$0xff]  }
 0x3c7   : > { %1606 = vmatprep.subr.bf16.mxu1 %v2635_v51 }
 0x3ca   : > { %2442 = vmatmul.mubr.msk.bf16.vlgmr.msra.gmra.mxu0 %vm591_vm4, %v3147_v50  ;;  %1607 = vmatpush1.bf16.msra.mxu1 %v2633_v52  ;;  %v2653_v50 = vld [vmem:[#allocation7 + $0x4] ss:$8 sps:$4 sm:$0xff]  }
 0x3cb   : > { %1608 = vmatprep.subr.bf16.mxu1 %v2638_v53  ;;  %2388 = vmatpush3.bf16.msra.mxu0 %v2679_v30 }
 0x3cc   : > { %2389 = vmatprep.subr.bf16.mxu0 %v2680_v31 }
 0x3ce   : > { %1609 = vmatpush1.bf16.msra.mxu1 %v2636_v54 }
 0x3cf   : > { %1610 = vmatprep.subr.bf16.mxu1 %v2641_v55  ;;  %2390 = vmatpush3.bf16.msra.mxu0 %v2681_v32  ;;  %v1833_v55 = vld [vmem:[%s3268_s9] sm:$0x3] }
 0x3d0   : > { %2391 = vmatprep.subr.bf16.mxu0 %v2682_v33 }
 0x3d2   : > { %1611 = vmatpush1.bf16.msra.mxu1 %v2639_v0 }
 0x3d3   : > { %1612 = vmatprep.subr.bf16.mxu1 %v2644_v56  ;;  %2392 = vmatpush3.bf16.msra.mxu0 %v2683_v35 }
 0x3d4   : > { %2393 = vmatprep.subr.bf16.mxu0 %v2684_v36 }
 0x3d6   : > { %1613 = vmatpush1.bf16.msra.mxu1 %v2642_v57 }
 0x3d7   : > { %1614 = vmatprep.subr.bf16.mxu1 %v2647_v34  ;;  %2394 = vmatpush3.bf16.msra.mxu0 %v2685_v37  ;;  %v1842_v34 = vrot.slane %v1833_v55, %v1121_v43 }
 0x3d8   : > { %2395 = vmatprep.subr.bf16.mxu0 %v2686_v38 }
 0x3da   : > { %1615 = vmatpush1.bf16.msra.mxu1 %v2645_v58 }
 0x3db   : > { %1616 = vmatprep.subr.bf16.mxu1 %v2650_v60  ;;  %2396 = vmatpush3.bf16.msra.mxu0 %v2687_v39  ;;  %v1838_v60 = vrot.slane %v1833_v55, %v1117_v45 }
 0x3dc   : > { %2397 = vmatprep.subr.bf16.mxu0 %v2688_v40 }
 0x3de   : > { %1617 = vmatpush1.bf16.msra.mxu1 %v2648_v59 }
 0x3df   : > { %1618 = vmatprep.subr.bf16.mxu1 %v2653_v50  ;;  %2398 = vmatpush3.bf16.msra.mxu0 %v2689_v41 }
 0x3e0   : > { %2399 = vmatprep.subr.bf16.mxu0 %v2690_v44 }
 0x3e2   : > { %1619 = vmatpush1.bf16.msra.mxu1 %v2651_v61 }
 0x3e3   : > { %1786 = vmatprep.subr.bf16.mxu1 %v2656_v62  ;;  %2400 = vmatpush3.bf16.msra.mxu0 %v2691_v46 }
 0x3e4   : > { %2401 = vmatprep.subr.bf16.mxu0 %v2692_v47 }
 0x3e7   : > { %2402 = vmatpush3.bf16.msra.mxu0 %v2693_v48 }
 0x482   : > { %v3229_v63 = vpop.f32.mrf.mxu0 }
 0x484   : > { %v3231_v1 = vpop.f32.mrf.mxu0 }
 0x485   : > { %v1360_v2 = vpop.f32.mrf.mxu1 }
 0x486   : > { %v3233_v3 = vpop.f32.mrf.mxu0 }
 0x487   : > { %v2437_v4 = vpop.f32.mrf.mxu1 }
 0x488   : > { %v3235_v5 = vpop.f32.mrf.mxu0 }
 0x489   : > { %v1363_v7 = vpop.f32.mrf.mxu1 }
 0x48a   : > { %v1367_v9 = vpack.c.bf16 %v1363_v7, %v1360_v2  ;;  %v1681_v11 = vpop.f32.mrf.mxu0 }
 0x48b   : > { %v2438_v12 = vpop.f32.mrf.mxu1 }
 0x48c   : > { %1637 = vmatmul.mubr.bf16.vlgmr.msra.gmra.mxu1 %v1367_v9  ;;  %v2443_v13 = vpop.f32.mrf.mxu0 }
 0x48d   : > { %1787 = vmatpush1.bf16.msra.mxu1 %v2654_v8  ;;  %1818 = vmatprep.mubr.bf16.mxu1 %v2855_v6  ;;  %v2674_v6 = vld [vmem:[#allocation7 + $0x114] ss:$8 sps:$4 sm:$0xff]  }
 0x48e   : > { %1788 = vmatprep.subr.bf16.mxu1 %v2659_v10  ;;  %v1684_v16 = vpop.f32.mrf.mxu0 }
 0x48f   : > { %v1688_v28 = vpack.c.bf16 %v1684_v16, %v1681_v11  ;;  %v2331_v16 = vld [vmem:[%s3270_s11] ss:$0 sm:$0xff] }
 0x490   : > { %v2444_v17 = vpop.f32.mrf.mxu0 }
 0x491   : > { %1789 = vmatpush1.bf16.msra.mxu1 %v2657_v14 }
 0x492   : > { %1790 = vmatprep.subr.bf16.mxu1 %v2662_v15 }
 0x495   : > { %1791 = vmatpush1.bf16.msra.mxu1 %v2660_v18 }
 0x496   : > { %1792 = vmatprep.subr.bf16.mxu1 %v2665_v19 }
 0x499   : > { %1793 = vmatpush1.bf16.msra.mxu1 %v2663_v20 }
 0x49a   : > { %1794 = vmatprep.subr.bf16.mxu1 %v2668_v21 }
 0x49d   : > { %1795 = vmatpush1.bf16.msra.mxu1 %v2666_v22 }
 0x49e   : > { %1796 = vmatprep.subr.bf16.mxu1 %v2671_v23 }
 0x4a1   : > { %1797 = vmatpush1.bf16.msra.mxu1 %v2669_v24 }
 0x4a2   : > { %1798 = vmatprep.subr.bf16.mxu1 %v2674_v6 }
 0x4a5   : > { %1799 = vmatpush1.bf16.msra.mxu1 %v2672_v25 }
 0x4a6   : > { %1800 = vmatprep.subr.bf16.mxu1 %v2677_v26 }
 0x4a9   : > { %1801 = vmatpush1.bf16.msra.mxu1 %v2675_v27 }
 0x4ac   : > { %1819 = vmatmul.mubr.bf16.vlgmr.msra.gmra.mxu1 %v1688_v28 }
 0x54c   : > { %v1638_v49 = vpop.f32.mrf.mxu1 }
 0x54d   : > { %v1639_v0 = vadd.f32 %v1638_v49, %v3229_v63 }
 0x54e   : > { %v1640_v51 = vpop.f32.mrf.mxu1 }
 0x54f   : > { %v1641_v56 = vadd.f32 %v1640_v51, %v3231_v1 }
 0x550   : > { %v1642_v52 = vpop.f32.mrf.mxu1 }
 0x551   : > { %v1643_v58 = vadd.f32 %v1642_v52, %v3233_v3 }
 0x552   : > { %v1644_v53 = vpop.f32.mrf.mxu1 }
 0x553   : > { %v1645_v2 = vadd.f32 %v1644_v53, %v3235_v5 }
 0x56c   : > { %v1820_v54 = vpop.f32.mrf.mxu1 }
 0x56d   : > { %v1829_v59 = vadd.f32 %v1820_v54, %v1639_v0 }
 0x56e   : > { %v1822_v57 = vpop.f32.mrf.mxu1 }
 0x56f   : > { %v1830_v50 = vadd.f32 %v1822_v57, %v1641_v56  ;;  %v1845_v63 = vadd.f32 %v1838_v60, %v1829_v59 }
 0x570   : > { %v1824_v61 = vpop.f32.mrf.mxu1 }
 0x571   : > { %v1831_v62 = vadd.f32 %v1824_v61, %v1643_v58  ;;  %v1846_v4 = vadd.f32 %v1842_v34, %v1830_v50  ;;  %v1853_v11 = vmul.f32 0.1, %v1845_v63  ;;  %vm1849_vm13 = vcmp.ge.f32.partialorder %v1845_v63, 0.0 }
 0x572   : > { %v1826_v7 = vpop.f32.mrf.mxu1 }
 0x573   : > { %v1847_v8 = vadd.f32 %v1838_v60, %v1831_v62  ;;  %v1832_v1 = vadd.f32 %v1826_v7, %v1645_v2  ;;  %v1854_v10 = vmul.f32 0.1, %v1846_v4  ;;  %vm1850_vm12 = vcmp.ge.f32.partialorder %v1846_v4, 0.0 }
 0x574   : > { %v1857_v13 = vsel %vm1849_vm13, %v1845_v63, %v1853_v11 }
 0x575   : > { %v1855_v9 = vmul.f32 0.1, %v1847_v8  ;;  %vm1851_vm11 = vcmp.ge.f32.partialorder %v1847_v8, 0.0  ;;  %v1848_v43 = vadd.f32 %v1842_v34, %v1832_v1  ;;  %v1858_v3 = vsel %vm1850_vm12, %v1846_v4, %v1854_v10 }
 0x577   : > { %vm1852_vm14 = vcmp.ge.f32.partialorder %v1848_v43, 0.0  ;;  %v1856_v42 = vmul.f32 0.1, %v1848_v43  ;;  %v1859_v45 = vsel %vm1851_vm11, %v1847_v8, %v1855_v9 }
 0x578   : > { %v1861_v14 = vpack.c.bf16 %v1859_v45, %v1857_v13 }
 0x579   : > { %v1860_v12 = vsel %vm1852_vm14, %v1848_v43, %v1856_v42 }
 0x57a   : > { %v1862_v5 = vpack.c.bf16 %v1860_v12, %v1858_v3 }
 0x57c   : > { %2030 = vmatprep.mubr.bf16.mxu0 %v1862_v5 }
 0x57d   : > { %2031 = vmatmul.mubr.bf16.vlgmr.msra.gmra.mxu0 %v1861_v14 }
 0x63d   : > { %v2403_v15 = vpop.f32.mrf.mxu0 }
 0x63f   : > { %v2404_v17 = vpop.f32.mrf.mxu0 }
 0x640   : > { %v2405_v18 = vadd.f32 %v2404_v17, %v2403_v15 }
 0x641   : > { %v2406_v19 = vpop.f32.mrf.mxu0 }
 0x642   : > { %v2033_v20 = vadd.f32 %v2405_v18, %v2331_v16 }
 0x643   : > { %v2407_v21 = vpop.f32.mrf.mxu0 }
 0x644   : > { %vm2039_vm15 = vcmp.ge.f32.partialorder %v2033_v20, 0.0  ;;  %v2041_v22 = vmul.f32 0.1, %v2033_v20  ;;  %v2408_v23 = vadd.f32 %v2407_v21, %v2406_v19 }
 0x646   : > { %v2043_v24 = vsel %vm2039_vm15, %v2033_v20, %v2041_v22  ;;  %v2036_v6 = vadd.f32 %v2408_v23, %v2331_v16 }
 0x647   : > { %2045 = vst [vmem:[%s484_s26] sm:$0xff] %v2043_v24 }
 0x648   : > { %vm2040_vm0 = vcmp.ge.f32.partialorder %v2036_v6, 0.0  ;;  %v2042_v25 = vmul.f32 0.1, %v2036_v6 }
 0x64a   : > { %v2044_v26 = vsel %vm2040_vm0, %v2036_v6, %v2042_v25 }
 0x64b   : > { %2046 = vst [vmem:[%s484_s26 + $0x8] sm:$0xff] %v2044_v26 }
 0x64c PF: > { %s25_s21 = sadd.s32 1, %s2842_s21  }
 0x64d   : > { %p22_p2 = scmp.ge.s32.totalorder %s25_s21, 4  }
 0x64f   :  { %24 = sbr.rel (!%p22_p2) target bundleno = 3 (0x3), region = 124 }
 0x654   :  { %2068 = vsyncpa [#allocation3], 1 }
 0x655   :  { %2070 = vsyncpa [#allocation3 + $0x1], 1 }
 0x656   :  { %2071 = vsyncpa [#allocation5], 1 }
 0x657   :  { %2072 = vsyncpa [#allocation8], 1 }

</bundles_post_ra>
